<compile_context>
chip_gen: v6e
topology: v6e:2x2x1
jax: 0.10.0
libtpu: 0.0.40
codegen_flags: <defaults>
</compile_context>

<pallas_src>
import functools
import math

import jax
import jax.numpy as jnp
from jax import lax
from jax.experimental import pallas as pl
from jax.experimental.pallas import tpu as pltpu

_LN_EPS = 1e-5
_SQRT_2 = math.sqrt(2.0)
_GELU_C = math.sqrt(2.0 / math.pi)
_VMEM_CAP = 48 << 20   # leaves headroom even on v7x's 64 MiB per-TC VMEM


# ----------------------------------------------------------------------------
# small helpers
# ----------------------------------------------------------------------------
def _round_up(x, m):
    return ((x + m - 1) // m) * m


def _nbytes(shape, dtype):
    n = 1
    for s in shape:
        n *= int(s)
    return n * jnp.dtype(dtype).itemsize


def _vmem_limit(*block_bytes):
    # inputs/outputs are double-buffered by the pipeline; add headroom for f32
    # intermediates / spills; never exceed the portable 48 MiB cap.
    need = 2 * sum(int(b) for b in block_bytes)
    need = int(need * 1.5) + (4 << 20)
    return int(min(max(need, 8 << 20), _VMEM_CAP))


def _pick_tile_m(M):
    # Largest MXU-friendly token tile whose tail padding stays <= ~25% of M
    # (avoids e.g. M=300 -> Mp=512 waste); tiles are multiples of 8 sublanes.
    cands = (512, 448, 384, 320, 256, 192, 128, 64, 32, 16, 8)
    thresh = max(M // 4, 8)
    for tm in cands:
        Mp = _round_up(M, tm)
        if Mp - M <= thresh:
            return tm, Mp
    return 8, _round_up(M, 8)


def _gelu_tanh(x):
    # tanh-approximate GELU: the tanh lowers to the EUP slot, keeping the VALU
    # free next to the MXU (erf would be a long VPU polynomial).
    return 0.5 * x * (1.0 + jnp.tanh(_GELU_C * (x + 0.044715 * x * x * x)))


def _layernorm_f32(x, gamma, beta, eps):
    mu = jnp.mean(x, axis=-1, keepdims=True)
    xc = x - mu
    var = jnp.mean(xc * xc, axis=-1, keepdims=True)
    return xc * lax.rsqrt(var + eps) * gamma + beta


# ----------------------------------------------------------------------------
# kernels
# ----------------------------------------------------------------------------
def _ln_matmul_kernel(x_ref, g_ref, bln_ref, w_ref, b_ref, o_ref, *, eps, act):
    # y = act(LayerNorm(x) @ W + b)   (LN in f32, matmul operands bf16, f32 acc)
    x = x_ref[...].astype(jnp.float32)
    xn = _layernorm_f32(x, g_ref[...], bln_ref[...], eps)
    y = jnp.dot(xn.astype(w_ref.dtype), w_ref[...],
                preferred_element_type=jnp.float32) + b_ref[...]
    if act == "gelu":
        y = _gelu_tanh(y)
    o_ref[...] = y.astype(o_ref.dtype)


def _attention_kernel(qkv_ref, o_ref, *, num_heads, head_dim, scale):
    # One batch element per grid step.  qkv_ref is the token-major (N, 3C)
    # projection output (q | k | v, each laid out head-contiguously), so no HBM
    # transpose is needed; q @ k^T is done by contracting the last dims.
    C = num_heads * head_dim
    outs = []
    for h in range(num_heads):
        q = qkv_ref[:, h * head_dim:(h + 1) * head_dim]                  # (N, hd)
        k = qkv_ref[:, C + h * head_dim:C + (h + 1) * head_dim]
        v = qkv_ref[:, 2 * C + h * head_dim:2 * C + (h + 1) * head_dim]
        s = lax.dot_general(q, k, (((1,), (1,)), ((), ())),
                            preferred_element_type=jnp.float32) * scale  # (N, N)
        s = s - jnp.max(s, axis=-1, keepdims=True)
        p = jnp.exp(s)
        p = p * pl.reciprocal(jnp.sum(p, axis=-1, keepdims=True), approx=True)
        outs.append(jnp.dot(p.astype(v.dtype), v,
                            preferred_element_type=jnp.float32))         # (N, hd)
    # heads concatenated -> lane-dense (N, C) store, already (B, N, H, hd)-contig
    o_ref[...] = jnp.concatenate(outs, axis=-1).astype(o_ref.dtype)


def _matmul_residual_kernel(a_ref, w_ref, b_ref, r_ref, o_ref):
    # y = residual + (a @ W + b)
    y = jnp.dot(a_ref[...], w_ref[...],
                preferred_element_type=jnp.float32) + b_ref[...]
    o_ref[...] = (r_ref[...].astype(jnp.float32) + y).astype(o_ref.dtype)


def _ln_mlp_residual_kernel(x_ref, g_ref, bln_ref, w1_ref, b1_ref,
                            w2_ref, b2_ref, o_ref, *, eps):
    # y = x + fc2( GELU( fc1( LayerNorm(x) ) ) )
    x = x_ref[...].astype(jnp.float32)
    xn = _layernorm_f32(x, g_ref[...], bln_ref[...], eps)
    h = jnp.dot(xn.astype(w1_ref.dtype), w1_ref[...],
                preferred_element_type=jnp.float32) + b1_ref[...]
    h = _gelu_tanh(h).astype(w2_ref.dtype)      # bf16 intermediate halves spills
    y = jnp.dot(h, w2_ref[...], preferred_element_type=jnp.float32) + b2_ref[...]
    o_ref[...] = (x + y).astype(o_ref.dtype)


# ----------------------------------------------------------------------------
# pallas_call wrappers
# ----------------------------------------------------------------------------
def _ln_matmul(x2d, gamma, beta, w, b, out_dtype, tile_m, act="none"):
    Mp, C = x2d.shape
    Co = w.shape[1]
    cost = pl.CostEstimate(
        flops=2 * Mp * C * Co + 10 * Mp * C,
        transcendentals=Mp + (Mp * Co if act == "gelu" else 0),
        bytes_accessed=_nbytes(x2d.shape, x2d.dtype) + _nbytes(w.shape, w.dtype)
        + _nbytes((Mp, Co), out_dtype))
    vmem = _vmem_limit(
        _nbytes((tile_m, C), x2d.dtype), _nbytes((tile_m, Co), out_dtype),
        _nbytes(w.shape, w.dtype), _nbytes((1, Co), b.dtype),
        2 * _nbytes((1, C), gamma.dtype), _nbytes((tile_m, Co), jnp.float32))
    return pl.pallas_call(
        functools.partial(_ln_matmul_kernel, eps=_LN_EPS, act=act),
        out_shape=jax.ShapeDtypeStruct((Mp, Co), out_dtype),
        grid_spec=pltpu.PrefetchScalarGridSpec(
            num_scalar_prefetch=0,
            grid=(Mp // tile_m,),
            in_specs=[
                pl.BlockSpec((tile_m, C), lambda i: (i, 0)),   # x tile
                pl.BlockSpec((1, C), lambda i: (0, 0)),        # LN gamma
                pl.BlockSpec((1, C), lambda i: (0, 0)),        # LN beta
                pl.BlockSpec((C, Co), lambda i: (0, 0)),       # W (resident)
                pl.BlockSpec((1, Co), lambda i: (0, 0)),       # bias
            ],
            out_specs=pl.BlockSpec((tile_m, Co), lambda i: (i, 0)),
        ),
        compiler_params=pltpu.CompilerParams(
            dimension_semantics=("parallel",), vmem_limit_bytes=vmem),
        cost_estimate=cost,
    )(x2d, gamma, beta, w, b)


def _attention(qkv3, num_heads, head_dim, scale, out_dtype):
    B, N, C3 = qkv3.shape
    C = num_heads * head_dim
    cost = pl.CostEstimate(
        flops=4 * B * num_heads * N * N * head_dim + 6 * B * num_heads * N * N,
        transcendentals=B * num_heads * N * N,
        bytes_accessed=_nbytes(qkv3.shape, qkv3.dtype) + _nbytes((B, N, C), out_dtype))
    vmem = _vmem_limit(
        _nbytes((N, C3), qkv3.dtype), _nbytes((N, C), out_dtype),
        4 * _nbytes((N, N), jnp.float32), _nbytes((N, C), jnp.float32))
    return pl.pallas_call(
        functools.partial(_attention_kernel, num_heads=num_heads,
                          head_dim=head_dim, scale=scale),
        out_shape=jax.ShapeDtypeStruct((B, N, C), out_dtype),
        grid_spec=pltpu.PrefetchScalarGridSpec(
            num_scalar_prefetch=0,
            grid=(B,),
            in_specs=[pl.BlockSpec((None, N, C3), lambda b: (b, 0, 0))],
            out_specs=pl.BlockSpec((None, N, C), lambda b: (b, 0, 0)),
        ),
        compiler_params=pltpu.CompilerParams(
            dimension_semantics=("parallel",), vmem_limit_bytes=vmem),
        cost_estimate=cost,
    )(qkv3)


def _matmul_residual(a2d, w, b, res2d, out_dtype, tile_m):
    Mp, C = a2d.shape
    Co = w.shape[1]
    cost = pl.CostEstimate(
        flops=2 * Mp * C * Co + Mp * Co,
        transcendentals=0,
        bytes_accessed=_nbytes(a2d.shape, a2d.dtype) + _nbytes(w.shape, w.dtype)
        + _nbytes(res2d.shape, res2d.dtype) + _nbytes((Mp, Co), out_dtype))
    vmem = _vmem_limit(
        _nbytes((tile_m, C), a2d.dtype), _nbytes((tile_m, Co), res2d.dtype),
        _nbytes((tile_m, Co), jnp.float32), _nbytes(w.shape, w.dtype),
        _nbytes((1, Co), b.dtype))
    return pl.pallas_call(
        _matmul_residual_kernel,
        out_shape=jax.ShapeDtypeStruct((Mp, Co), out_dtype),
        grid_spec=pltpu.PrefetchScalarGridSpec(
            num_scalar_prefetch=0,
            grid=(Mp // tile_m,),
            in_specs=[
                pl.BlockSpec((tile_m, C), lambda i: (i, 0)),   # matmul input tile
                pl.BlockSpec((C, Co), lambda i: (0, 0)),       # W (resident)
                pl.BlockSpec((1, Co), lambda i: (0, 0)),       # bias
                pl.BlockSpec((tile_m, Co), lambda i: (i, 0)),  # residual tile
            ],
            out_specs=pl.BlockSpec((tile_m, Co), lambda i: (i, 0)),
        ),
        compiler_params=pltpu.CompilerParams(
            dimension_semantics=("parallel",), vmem_limit_bytes=vmem),
        cost_estimate=cost,
    )(a2d, w, b, res2d)


def _ln_mlp_residual(x2d, gamma, beta, w1, b1, w2, b2, tile_m):
    Mp, C = x2d.shape
    Ch = w1.shape[1]
    Co = w2.shape[1]
    cost = pl.CostEstimate(
        flops=2 * Mp * (C * Ch + Ch * Co) + 10 * Mp * C,
        transcendentals=Mp * Ch + Mp,
        bytes_accessed=_nbytes(x2d.shape, x2d.dtype) + _nbytes(w1.shape, w1.dtype)
        + _nbytes(w2.shape, w2.dtype) + _nbytes((Mp, Co), jnp.float32))
    vmem = _vmem_limit(
        _nbytes((tile_m, C), x2d.dtype), _nbytes((tile_m, Co), jnp.float32),
        _nbytes(w1.shape, w1.dtype), _nbytes(w2.shape, w2.dtype),
        _nbytes((1, Ch), b1.dtype), _nbytes((1, Co), b2.dtype),
        2 * _nbytes((1, C), gamma.dtype),
        _nbytes((tile_m, Ch), jnp.float32))   # f32 fc1/GELU intermediate
    return pl.pallas_call(
        functools.partial(_ln_mlp_residual_kernel, eps=_LN_EPS),
        out_shape=jax.ShapeDtypeStruct((Mp, Co), jnp.float32),
        grid_spec=pltpu.PrefetchScalarGridSpec(
            num_scalar_prefetch=0,
            grid=(Mp // tile_m,),
            in_specs=[
                pl.BlockSpec((tile_m, C), lambda i: (i, 0)),   # x tile (residual)
                pl.BlockSpec((1, C), lambda i: (0, 0)),        # LN gamma
                pl.BlockSpec((1, C), lambda i: (0, 0)),        # LN beta
                pl.BlockSpec((C, Ch), lambda i: (0, 0)),       # W_fc1 (resident)
                pl.BlockSpec((1, Ch), lambda i: (0, 0)),       # b_fc1
                pl.BlockSpec((Ch, Co), lambda i: (0, 0)),      # W_fc2 (resident)
                pl.BlockSpec((1, Co), lambda i: (0, 0)),       # b_fc2
            ],
            out_specs=pl.BlockSpec((tile_m, Co), lambda i: (i, 0)),
        ),
        compiler_params=pltpu.CompilerParams(
            dimension_semantics=("parallel",), vmem_limit_bytes=vmem),
        cost_estimate=cost,
    )(x2d, gamma, beta, w1, b1, w2, b2)


# ----------------------------------------------------------------------------
# full Block forward
# ----------------------------------------------------------------------------
def vit_block_forward(x, params, *, num_heads):
    """ViT Block forward (inference).  x: (B, N, C) float32.
    params: dict of float32 parameters; Linear weights in (in, out) layout."""
    B, N, C = x.shape
    H = num_heads
    assert C % H == 0
    hd = C // H
    scale = float(hd) ** -0.5
    M = B * N

    # token tiling: MXU-friendly tile with minimal tail padding
    tm, Mp = _pick_tile_m(M)

    f32, bf16 = jnp.float32, jnp.bfloat16

    x2d = x.reshape(M, C).astype(f32)
    if Mp != M:
        x2d = jnp.pad(x2d, ((0, Mp - M), (0, 0)))

    # weights as bf16 matmul operands; LN params & biases stay f32
    g1 = params["norm1_w"].reshape(1, C).astype(f32)
    be1 = params["norm1_b"].reshape(1, C).astype(f32)
    w_qkv = params["qkv_w"].astype(bf16)
    b_qkv = params["qkv_b"].reshape(1, 3 * C).astype(f32)
    w_proj = params["proj_w"].astype(bf16)
    b_proj = params["proj_b"].reshape(1, C).astype(f32)
    g2 = params["norm2_w"].reshape(1, C).astype(f32)
    be2 = params["norm2_b"].reshape(1, C).astype(f32)
    w_fc1 = params["fc1_w"].astype(bf16)
    b_fc1 = params["fc1_b"].reshape(1, -1).astype(f32)
    w_fc2 = params["fc2_w"].astype(bf16)
    b_fc2 = params["fc2_b"].reshape(1, C).astype(f32)
    Ch = w_fc1.shape[1]

    # 1) LayerNorm1 + QKV projection (fused), token tiled
    qkv2d = _ln_matmul(x2d, g1, be1, w_qkv, b_qkv, bf16, tm)       # (Mp, 3C) bf16

    # 2) multi-head self attention: reads token-major qkv directly (no HBM
    #    transposes), writes output already in (B, N, H*hd) = (B, N, C) layout
    qkv3 = (qkv2d if Mp == M else qkv2d[:M]).reshape(B, N, 3 * C)
    attn = _attention(qkv3, H, hd, scale, bf16)                    # (B, N, C) bf16
    attn2d = attn.reshape(M, C)
    if Mp != M:
        attn2d = jnp.pad(attn2d, ((0, Mp - M), (0, 0)))

    # 3) output projection + first residual; residual stream carried in bf16
    x1 = _matmul_residual(attn2d, w_proj, b_proj, x2d, bf16, tm)   # (Mp, C) bf16

    # 4) LayerNorm2 + MLP + second residual.  Fused single kernel when the
    #    (double-buffered) resident fc1+fc2 weights fit the 48 MiB budget,
    #    otherwise split into LN+fc1+GELU and fc2+residual (v7x-safe).
    fused_need = (2 * _nbytes((tm, C), bf16) + 2 * _nbytes((tm, C), f32)
                  + 2 * (_nbytes((C, Ch), bf16) + _nbytes((Ch, C), bf16))
                  + _nbytes((tm, Ch), f32) + _nbytes((tm, Ch), bf16)
                  + 2 * _nbytes((tm, C), f32))
    if fused_need <= int(0.85 * _VMEM_CAP):
        y = _ln_mlp_residual(x1, g2, be2, w_fc1, b_fc1, w_fc2, b_fc2, tm)
    else:
        h = _ln_matmul(x1, g2, be2, w_fc1, b_fc1, bf16, tm, act="gelu")
        y = _matmul_residual(h, w_fc2, b_fc2, x1, f32, tm)

    out = y if Mp == M else y[:M]
    return out.reshape(B, N, C)


# ----------------------------------------------------------------------------
# pure-JAX f32 reference (mirrors the torch Block forward, exact erf GELU)
# ----------------------------------------------------------------------------
def _block_reference(x, params, num_heads, eps=_LN_EPS):
    B, N, C = x.shape
    H = num_heads
    hd = C // H
    scale = float(hd) ** -0.5

    def ln(v, g, b):
        mu = v.mean(-1, keepdims=True)
        var = ((v - mu) ** 2).mean(-1, keepdims=True)
        return (v - mu) / jnp.sqrt(var + eps) * g + b

    h = ln(x, params["norm1_w"], params["norm1_b"])
    qkv = h @ params["qkv_w"] + params["qkv_b"]
    qkv = qkv.reshape(B, N, 3, H, hd).transpose(2, 0, 3, 1, 4)
    q, k, v = qkv[0], qkv[1], qkv[2]
    attn = jax.nn.softmax(jnp.einsum("bhnd,bhmd->bhnm", q, k) * scale, axis=-1)
    o = jnp.einsum("bhnm,bhmd->bhnd", attn, v)
    o = o.transpose(0, 2, 1, 3).reshape(B, N, C)
    x = x + o @ params["proj_w"] + params["proj_b"]
    h = ln(x, params["norm2_w"], params["norm2_b"])
    h = h @ params["fc1_w"] + params["fc1_b"]
    h = 0.5 * h * (1.0 + lax.erf(h / _SQRT_2))
    return x + h @ params["fc2_w"] + params["fc2_b"]


if __name__ == "__main__":
    # small ViT-style Block: batch=2, seq=8, dim=64, heads=8, mlp_ratio=4
    B, N = 2, 8
    dim, num_heads, mlp_ratio = 64, 8, 4.0
    hidden = int(dim * mlp_ratio)

    key = jax.random.PRNGKey(0)
    keys = jax.random.split(key, 8)
    x = jax.random.normal(keys[0], (B, N, dim), jnp.float32)

    params = {
        "norm1_w": jnp.ones((dim,), jnp.float32),
        "norm1_b": jnp.zeros((dim,), jnp.float32),
        "qkv_w": jax.random.normal(keys[1], (dim, 3 * dim), jnp.float32) * 0.02,
        "qkv_b": jnp.zeros((3 * dim,), jnp.float32),          # qkv_bias=False
        "proj_w": jax.random.normal(keys[2], (dim, dim), jnp.float32) * 0.02,
        "proj_b": jax.random.normal(keys[3], (dim,), jnp.float32) * 0.01,
        "norm2_w": jnp.ones((dim,), jnp.float32),
        "norm2_b": jnp.zeros((dim,), jnp.float32),
        "fc1_w": jax.random.normal(keys[4], (dim, hidden), jnp.float32) * 0.02,
        "fc1_b": jax.random.normal(keys[5], (hidden,), jnp.float32) * 0.01,
        "fc2_w": jax.random.normal(keys[6], (hidden, dim), jnp.float32) * 0.02,
        "fc2_b": jax.random.normal(keys[7], (dim,), jnp.float32) * 0.01,
    }

    y = vit_block_forward(x, params, num_heads=num_heads)
    jax.block_until_ready(y)

    y_ref = _block_reference(x, params, num_heads)
    assert y.shape == y_ref.shape
    assert bool(jnp.all(jnp.isfinite(y)))
    # bf16 matmul operands / bf16 residual carry / tanh-GELU / approx reciprocal:
    # allow mixed-precision tolerance
    assert jnp.allclose(y, y_ref, atol=3e-2, rtol=3e-2), float(
        jnp.max(jnp.abs(y - y_ref)))

    print("KERNEL_OK")
</pallas_src>

<mosaic_0001>
module attributes {stable_mosaic.version = 11 : i64} {
  func.func @_ln_matmul_kernel(%arg0: i32, %arg1: memref<16x64xf32, #tpu.memory_space<vmem>>, %arg2: memref<1x64xf32, #tpu.memory_space<vmem>>, %arg3: memref<1x64xf32, #tpu.memory_space<vmem>>, %arg4: memref<64x192xbf16, #tpu.memory_space<vmem>>, %arg5: memref<1x192xf32, #tpu.memory_space<vmem>>, %arg6: memref<16x192xbf16, #tpu.memory_space<vmem>>) attributes {dimension_semantics = [#tpu.dimension_semantics<parallel>], iteration_bounds = array<i64: 1>, scalar_prefetch = 0 : i64, scratch_operands = 0 : i64, tpu.core_type = #tpu.core_type<tc>, window_params = [{transform_indices = @transform_0, window_bounds = array<i64: 16, 64>}, {pipeline_mode = #tpu.pipeline_mode<synchronous>, transform_indices = @transform_1, window_bounds = array<i64: 1, 64>}, {pipeline_mode = #tpu.pipeline_mode<synchronous>, transform_indices = @transform_2, window_bounds = array<i64: 1, 64>}, {pipeline_mode = #tpu.pipeline_mode<synchronous>, transform_indices = @transform_3, window_bounds = array<i64: 64, 192>}, {pipeline_mode = #tpu.pipeline_mode<synchronous>, transform_indices = @transform_4, window_bounds = array<i64: 1, 192>}, {transform_indices = @transform_5, window_bounds = array<i64: 16, 192>}]} {
    %c0 = arith.constant 0 : index
    %c0_0 = arith.constant 0 : index
    %0 = vector.load %arg1[%c0, %c0_0] : memref<16x64xf32, #tpu.memory_space<vmem>>, vector<16x64xf32>
    %c0_1 = arith.constant 0 : index
    %c0_2 = arith.constant 0 : index
    %1 = vector.load %arg2[%c0_1, %c0_2] : memref<1x64xf32, #tpu.memory_space<vmem>>, vector<1x64xf32>
    %c0_3 = arith.constant 0 : index
    %c0_4 = arith.constant 0 : index
    %2 = vector.load %arg3[%c0_3, %c0_4] : memref<1x64xf32, #tpu.memory_space<vmem>>, vector<1x64xf32>
    %cst = arith.constant dense<0.000000e+00> : vector<16xf32>
    %3 = vector.multi_reduction <add>, %0, %cst [1] : vector<16x64xf32> to vector<16xf32>
    %4 = vector.shape_cast %3 : vector<16xf32> to vector<16x1xf32>
    %cst_5 = arith.constant 6.400000e+01 : f32
    %5 = vector.broadcast %cst_5 : f32 to vector<16x1xf32>
    %6 = arith.divf %4, %5 : vector<16x1xf32>
    %7 = vector.broadcast %6 : vector<16x1xf32> to vector<16x64xf32>
    %8 = arith.subf %0, %7 : vector<16x64xf32>
    %9 = arith.mulf %8, %8 : vector<16x64xf32>
    %cst_6 = arith.constant dense<0.000000e+00> : vector<16xf32>
    %10 = vector.multi_reduction <add>, %9, %cst_6 [1] : vector<16x64xf32> to vector<16xf32>
    %11 = vector.shape_cast %10 : vector<16xf32> to vector<16x1xf32>
    %cst_7 = arith.constant 6.400000e+01 : f32
    %12 = vector.broadcast %cst_7 : f32 to vector<16x1xf32>
    %13 = arith.divf %11, %12 : vector<16x1xf32>
    %cst_8 = arith.constant 9.99999974E-6 : f32
    %14 = vector.broadcast %cst_8 : f32 to vector<16x1xf32>
    %15 = arith.addf %13, %14 : vector<16x1xf32>
    %16 = math.rsqrt %15 : vector<16x1xf32>
    %17 = vector.broadcast %16 : vector<16x1xf32> to vector<16x64xf32>
    %18 = arith.mulf %8, %17 : vector<16x64xf32>
    %19 = vector.broadcast %1 : vector<1x64xf32> to vector<16x64xf32>
    %20 = arith.mulf %18, %19 : vector<16x64xf32>
    %21 = vector.broadcast %2 : vector<1x64xf32> to vector<16x64xf32>
    %22 = arith.addf %20, %21 : vector<16x64xf32>
    %23 = arith.truncf %22 : vector<16x64xf32> to vector<16x64xbf16>
    %c0_9 = arith.constant 0 : index
    %c0_10 = arith.constant 0 : index
    %24 = vector.load %arg4[%c0_9, %c0_10] : memref<64x192xbf16, #tpu.memory_space<vmem>>, vector<64x192xbf16>
    %cst_11 = arith.constant dense<0.000000e+00> : vector<16x192xf32>
    %25 = tpu.matmul %23, %24, %cst_11 {dimension_numbers = #tpu.dot_dimension_numbers<[1], [0], [0], [1], [0, 0, 1, 1], [], []>} : vector<16x64xbf16>, vector<64x192xbf16>, vector<16x192xf32> -> vector<16x192xf32>
    %c0_12 = arith.constant 0 : index
    %c0_13 = arith.constant 0 : index
    %26 = vector.load %arg5[%c0_12, %c0_13] : memref<1x192xf32, #tpu.memory_space<vmem>>, vector<1x192xf32>
    %27 = vector.broadcast %26 : vector<1x192xf32> to vector<16x192xf32>
    %28 = arith.addf %25, %27 : vector<16x192xf32>
    %29 = arith.truncf %28 : vector<16x192xf32> to vector<16x192xbf16>
    %c0_14 = arith.constant 0 : index
    %c0_15 = arith.constant 0 : index
    %30 = vector.load %arg6[%c0_14, %c0_15] : memref<16x192xbf16, #tpu.memory_space<vmem>>, vector<16x192xbf16>
    tpu.vector_store %arg6[%c0_14, %c0_15], %29 {strides = array<i32>} : memref<16x192xbf16, #tpu.memory_space<vmem>>, vector<16x192xbf16>,
    return
  }
  func.func @transform_0(%arg0: i32) -> (i32, i32) {
    %c0_i32 = arith.constant 0 : i32
    %c0_i32_0 = arith.constant 0 : i32
    return %arg0, %c0_i32 : i32, i32
  }
  func.func @transform_1(%arg0: i32) -> (i32, i32) {
    %c0_i32 = arith.constant 0 : i32
    %c0_i32_0 = arith.constant 0 : i32
    %c0_i32_1 = arith.constant 0 : i32
    return %c0_i32, %c0_i32_0 : i32, i32
  }
  func.func @transform_2(%arg0: i32) -> (i32, i32) {
    %c0_i32 = arith.constant 0 : i32
    %c0_i32_0 = arith.constant 0 : i32
    %c0_i32_1 = arith.constant 0 : i32
    return %c0_i32, %c0_i32_0 : i32, i32
  }
  func.func @transform_3(%arg0: i32) -> (i32, i32) {
    %c0_i32 = arith.constant 0 : i32
    %c0_i32_0 = arith.constant 0 : i32
    %c0_i32_1 = arith.constant 0 : i32
    return %c0_i32, %c0_i32_0 : i32, i32
  }
  func.func @transform_4(%arg0: i32) -> (i32, i32) {
    %c0_i32 = arith.constant 0 : i32
    %c0_i32_0 = arith.constant 0 : i32
    %c0_i32_1 = arith.constant 0 : i32
    return %c0_i32, %c0_i32_0 : i32, i32
  }
  func.func @transform_5(%arg0: i32) -> (i32, i32) {
    %c0_i32 = arith.constant 0 : i32
    %c0_i32_0 = arith.constant 0 : i32
    return %arg0, %c0_i32 : i32, i32
  }
}

</mosaic_0001>

<bundles_post_ra>
// kernel: tpu_custom_call.1
= control target key start
LH: loop header
LB: loop body
LE: loop exit
PB: predicated region body
PF: predicated region fallthrough
CT: control target
= control target key end

     0   :  { %10 = vsyncpa [#allocation3], 0  ;;  %s444_s0 = inlined_call_operand.hbm [shape: f32[16,64], index: 0, kind: input, shape index: {}]   ;;  %s445_s1 = inlined_call_operand.vmem [shape: f32[1,64], index: 1, kind: input, shape index: {}]   ;;  %s446_s2 = inlined_call_operand.hbm [shape: f32[1,64], index: 2, kind: input, shape index: {}]   ;;  %s447_s3 = inlined_call_operand.hbm [shape: bf16[64,192], index: 3, kind: input, shape index: {}]   ;;  %s448_s4 = inlined_call_operand.vmem [shape: f32[1,192], index: 4, kind: input, shape index: {}]   ;;  %s449_s5 = inlined_call_operand.hbm [shape: bf16[16,192], index: 5, kind: output, shape index: {}]  }
   0x1   :  { %11 = vsyncpa [#allocation6], 0 }
   0x2   :  { %12 = vsyncpa [#allocation4], 0  ;;  %s375_s18 = smov [#allocation5]   ;;  %s376_s20 = smov [#allocation2]  }
   0x3   :  { %s33_s19 = sshll.u32 %s375_s18, 4  ;;  %s18_s21 = sshll.u32 %s376_s20, 4  ;;  %s34_s19 = int_to_ptr.vmem [resolvable:$true] %s33_s19  ;;  %s19_s21 = int_to_ptr.vmem [resolvable:$true] %s18_s21 }
   0x4   :  { %s297_s22 = scalar_lea.vmem %s34_s19, 16  ;;  %s301_s23 = scalar_lea.vmem %s34_s19, 32 }
   0x5   :  { %p298_p0 = scmp.ne.s32.totalorder %s34_s19, %s297_s22  ;;  %p302_p1 = scmp.lt.s32.totalorder %s34_s19, %s34_s19 }
   0x6   :  { %p303_p2 = scmp.lt.s32.totalorder %s301_s23, %s297_s22 }
   0x8   :  { %p304_p3 = por %p303_p2, %p302_p1 }
   0xa   :  { %p305_p4 = pnand %p304_p3, %p298_p0 }
   0xc   :  { %308 = shalt.err (!%p305_p4)
}
   0xd   :  { %36 = dma.hbm_to_vmem [thread:$0]  %s446_s2, 16, %s34_s19, [#allocation6]  }
   0xe   :  { %s317_s26 = scalar_lea.vmem %s19_s21, 256  ;;  %p322_p6 = scmp.lt.s32.totalorder %s19_s21, %s19_s21 }
   0xf   :  { %p318_p5 = scmp.ne.s32.totalorder %s19_s21, %s317_s26  ;;  %p323_p7 = scmp.lt.s32.totalorder %s317_s26, %s317_s26 }
  0x11   :  { %p324_p8 = por %p323_p7, %p322_p6 }
  0x13   :  { %p325_p9 = pnand %p324_p8, %p318_p5 }
  0x15   :  { %328 = shalt.err (!%p325_p9)
}
  0x16   :  { %s377_s27 = smov 128   ;;  %s378_s28 = smov 8  }
  0x17   :  { %24 = dma.hbm_to_vmem [thread:$0]  %s444_s0, 256, %s19_s21, [#allocation3], %s377_s27, %s377_s27, %s378_s28  }
  0x18   :  { %s379_s6 = smov [#allocation7]  }
  0x19   :  { %s42_s7 = sshll.u32 %s379_s6, 4  ;;  %s43_s7 = int_to_ptr.vmem [resolvable:$true] %s42_s7 }
  0x1a   :  { %s337_s2 = scalar_lea.vmem %s43_s7, 1024  ;;  %p342_p11 = scmp.lt.s32.totalorder %s43_s7, %s43_s7 }
  0x1b   :  { %p338_p10 = scmp.ne.s32.totalorder %s43_s7, %s337_s2  ;;  %p343_p12 = scmp.lt.s32.totalorder %s337_s2, %s337_s2 }
  0x1d   :  { %p344_p13 = por %p343_p12, %p342_p11 }
  0x1f   :  { %p345_p0 = pnand %p344_p13, %p338_p10 }
  0x21   :  { %348 = shalt.err (!%p345_p0)
}
  0x22   :  { %48 = dma.hbm_to_vmem [thread:$0]  %s447_s3, 1024, %s43_s7, [#allocation6], %s377_s27, %s377_s27, %s378_s28  }
  0x23   :  { %369 = dma.done.wait [#allocation3], 256  }
  0x24   :  { %370 = vsyncadd [#allocation3], 4294967040 }
  0x25   :  { %371 = dma.done.wait [#allocation6], 1040  }
  0x26   :  { %372 = vsyncadd [#allocation6], 4294966256  ;;  %vm65_vm0 = vcmask 523264   ;;  %v61_v0 = vld [vmem:[#allocation2] sm:$0xff]  ;;  %v62_v1 = vld [vmem:[#allocation2 + $0x8] sm:$0xff]  ;;  %v380_v18 = vmov 0   ;;  %v120_v40 = vlaneseq }
  0x27   :  { %v66_v2 = vsel %vm65_vm0, %v61_v0, 0.0  ;;  %v69_v3 = vsel %vm65_vm0, %v62_v1, 0.0  ;;  %v273_v14 = vld [vmem:[#allocation7 + $0x34] ss:$8 sps:$4 sm:$0xff]   ;;  %v275_v15 = vld [vmem:[#allocation7 + $0x30] ss:$8 sps:$4 sm:$0xff]   ;;  %205 = vmatprep.mubr.bf16.mxu0 %v380_v18 }
  0x28   :  { %67 = vadd.xlane.f32.xlu0 %v66_v2  ;;  %v276_v16 = vld [vmem:[#allocation7 + $0x24] ss:$8 sps:$4 sm:$0xff]   ;;  %181 = vmatprep.subr.bf16.mxu0 %v273_v14  ;;  %v278_v17 = vld [vmem:[#allocation7 + $0x20] ss:$8 sps:$4 sm:$0xff]   ;;  %v279_v19 = vld [vmem:[#allocation7 + $0x14] ss:$8 sps:$4 sm:$0xff]  }
  0x29   :  { %182 = vmatpush1.bf16.msra.mxu0 %v275_v15  ;;  %v281_v20 = vld [vmem:[#allocation7 + $0x10] ss:$8 sps:$4 sm:$0xff]   ;;  %v282_v21 = vld [vmem:[#allocation7 + $0x4] ss:$8 sps:$4 sm:$0xff]   ;;  %v284_v22 = vld [vmem:[#allocation7] ss:$8 sps:$4 sm:$0xff]  }
  0x2a   :  { %183 = vmatprep.subr.bf16.mxu0 %v276_v16  ;;  %v251_v31 = vld [vmem:[%s445_s1] ss:$0 sm:$0xff]  ;;  %v252_v35 = vld [vmem:[#allocation5] ss:$0 sm:$0xff]  ;;  %v121_v41 = vshrl.u32 %v120_v40, 7  ;;  %vm228_vm1 = vcmask 1043456  }
  0x2b   :  { %v118_v44 = vld [vmem:[%s448_s4] sm:$0x3]  ;;  %vm229_vm2 = vcmask 523268   ;;  %s381_s1 = smov [#allocation8]  }
  0x2c   :  { %70 = vadd.xlane.f32.xlu0 %v69_v3  ;;  %v122_v42 = vsub.s32 0, %v121_v41  ;;  %v126_v43 = vsub.s32 1, %v121_v41  ;;  %vm230_vm3 = vmor %vm229_vm2, %vm228_vm1  ;;  %s238_s12 = sshll.u32 %s381_s1, 4  ;;  %s239_s12 = int_to_ptr.vmem [resolvable:$true] %s238_s12 }
  0x2d   :  { %184 = vmatpush1.bf16.msra.mxu0 %v278_v17  ;;  %s349_s4 = scalar_lea.vmem %s239_s12, 256  ;;  %p354_p2 = scmp.lt.s32.totalorder %s239_s12, %s239_s12 }
  0x2e   :  { %185 = vmatprep.subr.bf16.mxu0 %v279_v19  ;;  %v123_v45 = vrot.slane %v118_v44, %v122_v42  ;;  %v127_v46 = vrot.slane %v118_v44, %v126_v43  ;;  %p350_p1 = scmp.ne.s32.totalorder %s239_s12, %s349_s4  ;;  %p355_p3 = scmp.lt.s32.totalorder %s349_s4, %s349_s4 }
  0x30   :  { %p356_p4 = por %p355_p3, %p354_p2 }
  0x31   :  { %186 = vmatpush1.bf16.msra.mxu0 %v281_v20 }
  0x32   :  { %187 = vmatprep.subr.bf16.mxu0 %v282_v21  ;;  %p357_p5 = pnand %p356_p4, %p350_p1 }
  0x35   :  { %188 = vmatpush1.bf16.msra.mxu0 %v284_v22 }
  0xb1   :  { %v68_v4 = vpop.xlane.xlu0 %67 }
  0xb2   :  { %v73_v5 = vmul.f32 0.015625, %v68_v4 }
  0xb4   :  { %v75_v6 = vsub.f32 %v61_v0, %v73_v5 }
  0xb5   :  { %v71_v7 = vpop.xlane.xlu0 %70 }
  0xb6   :  { %v74_v8 = vmul.f32 0.015625, %v71_v7  ;;  %v77_v9 = vmul.f32 %v75_v6, %v75_v6 }
  0xb8   :  { %v76_v10 = vsub.f32 %v62_v1, %v74_v8  ;;  %v79_v11 = vsel %vm65_vm0, %v77_v9, 0.0 }
  0xb9   :  { %80 = vadd.xlane.f32.xlu1 %v79_v11 }
  0xba   :  { %v78_v12 = vmul.f32 %v76_v10, %v76_v10 }
  0xbc   :  { %v82_v13 = vsel %vm65_vm0, %v78_v12, 0.0 }
  0xbd   :  { %83 = vadd.xlane.f32.xlu1 %v82_v13 }
 0x142   :  { %v81_v23 = vpop.xlane.xlu1 %80 }
 0x143   :  { %v85_v24 = vmul.f32 0.015625, %v81_v23 }
 0x145   :  { %v87_v25 = vadd.f32 1e-05, %v85_v24 }
 0x146   :  { %v84_v26 = vpop.xlane.xlu1 %83 }
 0x147   :  { %285 = vrsqrt.f32 %v87_v25  ;;  %v86_v27 = vmul.f32 0.015625, %v84_v26 }
 0x149   :  { %v88_v28 = vadd.f32 1e-05, %v86_v27 }
 0x14b   :  { %287 = vrsqrt.f32 %v88_v28 }
 0x154   :  { %v286_v29 = vpop.eup %285 }
 0x155   :  { %v91_v30 = vmul.f32 %v286_v29, %v75_v6 }
 0x157   :  { %v99_v34 = vmul.f32 %v251_v31, %v91_v30 }
 0x158   :  { %v288_v32 = vpop.eup %287 }
 0x159   :  { %v92_v33 = vmul.f32 %v288_v32, %v76_v10  ;;  %v107_v37 = vadd.f32 %v252_v35, %v99_v34 }
 0x15b   :  { %v100_v36 = vmul.f32 %v251_v31, %v92_v33 }
 0x15d   :  { %v108_v38 = vadd.f32 %v252_v35, %v100_v36 }
 0x15f   :  { %v109_v39 = vpack.c.bf16 %v108_v38, %v107_v37 }
 0x161   :  { %261 = vmatmul.mubr.msk.bf16.vlgmr.msra.gmra.mxu0 %vm65_vm0, %v109_v39 }
 0x221   :  { %v207_v47 = vpop.f32.mrf.mxu0 }
 0x222   :  { %v208_v49 = vadd.f32 %v207_v47, %v123_v45 }
 0x223   :  { %v209_v48 = vpop.f32.mrf.mxu0 }
 0x224   :  { %v210_v50 = vadd.f32 %v209_v48, %v127_v46 }
 0x225   :  { %v211_v51 = vpop.f32.mrf.mxu0 }
 0x226   :  { %v264_v52 = vpack.c.bf16 %v210_v50, %v208_v49  ;;  %v212_v54 = vadd.f32 %v211_v51, %v123_v45 }
 0x227   :  { %v213_v53 = vpop.f32.mrf.mxu0 }
 0x228   :  { %v214_v55 = vadd.f32 %v213_v53, %v127_v46  ;;  %231 = vst.msk [vmem:[#allocation8] sm:$0xff] %vm230_vm3, %v264_v52 }
 0x22a   :  { %v265_v56 = vpack.c.bf16 %v214_v55, %v212_v54 }
 0x22c   :  { %232 = vst.msk [vmem:[#allocation8 + $0x8] sm:$0xff] %vm230_vm3, %v265_v56 }
 0x22d   :  { %360 = shalt.err (!%p357_p5)
}
 0x22e   :  { %244 = dma.vmem_to_hbm [thread:$0]  %s239_s12, 256, %s449_s5, [#allocation4], %s377_s27, %s377_s27, %s378_s28  }
 0x22f   :  { %373 = dma.done.wait [#allocation4], 256  }
 0x230   :  { %374 = vsyncadd [#allocation4], 4294967040 }
 0x231   :  { %248 = vsyncpa [#allocation3], 1 }
 0x232   :  { %249 = vsyncpa [#allocation6], 1 }
 0x233   :  { %250 = vsyncpa [#allocation4], 1 }

</bundles_post_ra>
